<compile_context>
chip_gen: v5e
topology: v5e:2x2
jax: 0.10.0
libtpu: 0.0.40
codegen_flags: <defaults>
</compile_context>

<pallas_src>
import functools

import jax
import jax.numpy as jnp
from jax import lax
from jax.experimental import pallas as pl
from jax.experimental.pallas import tpu as pltpu

NUM_SEQUENCES = 2
OPS_PER_SEQUENCE = 3


def _roll(x, shift, axis):
    """pltpu.roll with a normalized (non-negative) static shift."""
    return pltpu.roll(x, shift % x.shape[axis], axis)


def _op_sequences_kernel(w_ref, x_ref, o_ref, *, num_ops, img_h, img_w,
                         imgs_per_slab):
    """w_ref: SMEM (num_ops*9,) f32, pre-scaled 3x3 weights (op-major, row-major).
       x_ref/o_ref: VMEM (Nb, Hp, S) f32 blocks. Each slab packs `imgs_per_slab`
       images of size (img_h, img_w) side-by-side along the lane axis; rows
       >= img_h and lanes >= imgs_per_slab*img_w are padding (values there are
       never allowed to leak into real pixels thanks to the border masks)."""
    x = x_ref[...]                      # single load; chain stays in vregs
    shape = x.shape

    # Hoisted border masks (computed once, reused by all ops).
    row = lax.broadcasted_iota(jnp.int32, shape, 1)
    col = lax.broadcasted_iota(jnp.int32, shape, 2)
    not_top = row > 0                   # rows that may read row i-1
    not_bot = row < img_h - 1           # rows that may read row i+1
    is_left = col == 0                  # left border column of each packed image
    is_right = col == img_w - 1         # right border column of each packed image
    for p in range(1, imgs_per_slab):
        is_left = jnp.logical_or(is_left, col == p * img_w)
        is_right = jnp.logical_or(is_right, col == (p + 1) * img_w - 1)
    not_left = jnp.logical_not(is_left)
    not_right = jnp.logical_not(is_right)
    zero = jnp.zeros(shape, x.dtype)    # hoisted (avoid per-op broadcasts)

    for op in range(num_ops):
        b = op * 9
        # Hoist the 9 scalar weight reads for this op (SMEM -> sregs).
        w00 = w_ref[b + 0]; w01 = w_ref[b + 1]; w02 = w_ref[b + 2]
        w10 = w_ref[b + 3]; w11 = w_ref[b + 4]; w12 = w_ref[b + 5]
        w20 = w_ref[b + 6]; w21 = w_ref[b + 7]; w22 = w_ref[b + 8]

        # Vertical taps x[i-1] / x[i] / x[i+1] with zero fill at image rows 0 / H-1
        # (sublane roll on the XLU + VPU select; no VMEM traffic).
        r_dn = jnp.where(not_top, _roll(x, 1, 1), zero)    # x[i-1, :]
        r_up = jnp.where(not_bot, _roll(x, -1, 1), zero)   # x[i+1, :]

        # Per-column 1-D vertical convolutions (pure VPU, full lane width).
        t_l = w00 * r_dn + w10 * x + w20 * r_up            # kernel column dj=0
        t_c = w01 * r_dn + w11 * x + w21 * r_up            # kernel column dj=1
        t_r = w02 * r_dn + w12 * x + w22 * r_up            # kernel column dj=2

        # Horizontal combine: out[:, j] = t_l[:, j-1] + t_c[:, j] + t_r[:, j+1],
        # zero-filled at each packed image's left/right border columns.
        left = jnp.where(not_left, _roll(t_l, 1, 2), zero)
        right = jnp.where(not_right, _roll(t_r, -1, 2), zero)
        x = left + t_c + right

    o_ref[...] = x                      # single, full-block, unmasked store


def op_sequences_add_conv2d(x_nchw, weights,
                            num_sequences=NUM_SEQUENCES,
                            ops_per_sequence=OPS_PER_SEQUENCE):
    """x_nchw: (N, 1, H, W) f32. weights: (num_ops, 1, 1, 3, 3) f32."""
    N, C, H, W = x_nchw.shape
    assert C == 1 and ops_per_sequence >= 1
    num_ops = num_sequences * ops_per_sequence
    assert weights.shape == (num_ops, 1, 1, 3, 3)

    # --- Fold the x+x doublings into the conv weights (linear graph, no bias):
    #     x2 on the last conv of each sequence, extra x2 on the very last conv.
    scale = jnp.ones((num_ops,), jnp.float32)
    last_ops = jnp.arange(ops_per_sequence - 1, num_ops, ops_per_sequence)
    scale = scale.at[last_ops].set(2.0)
    scale = scale.at[num_ops - 1].multiply(2.0)
    w_flat = (weights.reshape(num_ops, 9).astype(jnp.float32)
              * scale[:, None]).reshape(-1)

    # --- Pack images side-by-side along the 128-lane axis (layout plumbing,
    #     done once in XLA; keeps every kernel load/store lane-dense).
    x = x_nchw.reshape(N, H, W).astype(jnp.float32)
    G = max(1, min(128 // W, N)) if W <= 128 else 1      # images per slab
    n_pad = (-N) % G
    if n_pad:
        x = jnp.pad(x, ((0, n_pad), (0, 0), (0, 0)))
    Np = N + n_pad
    npack = Np // G
    xp = x.reshape(npack, G, H, W).transpose(0, 2, 1, 3).reshape(npack, H, G * W)
    # Round rows up to a sublane multiple and lanes up to a 128 multiple so the
    # rolls and stores sit on native (8,128) tiles; border masks in the kernel
    # keep the pad region from ever leaking into real pixels.
    Hp = ((H + 7) // 8) * 8
    S = ((G * W + 127) // 128) * 128
    if (Hp, S) != (H, G * W):
        xp = jnp.pad(xp, ((0, 0), (0, Hp - H), (0, S - G * W)))

    # --- Pick slabs-per-step so each DMA moves ~<=2 MiB (in+out double-buffered
    #     footprint ~<=8 MiB: safe for v7x's 64 MiB VMEM and the 32 MiB scoped
    #     default), and keep >=2 grid steps when possible for v7x's 2 TCs.
    slab_bytes = Hp * S * 4
    target_bytes = 2 * 1024 * 1024
    nb = max(1, min(npack, target_bytes // max(slab_bytes, 1)))
    while npack % nb:
        nb -= 1
    if npack // nb < 2 and nb > 1:
        nb = max(1, nb // 2)
        while npack % nb:
            nb -= 1

    kernel = functools.partial(_op_sequences_kernel, num_ops=num_ops,
                               img_h=H, img_w=W, imgs_per_slab=G)

    out_packed = pl.pallas_call(
        kernel,
        out_shape=jax.ShapeDtypeStruct((npack, Hp, S), jnp.float32),
        grid=(npack // nb,),
        in_specs=[
            pl.BlockSpec(memory_space=pltpu.MemorySpace.SMEM),   # folded weights
            pl.BlockSpec((nb, Hp, S), lambda n: (n, 0, 0)),      # packed images
        ],
        out_specs=pl.BlockSpec((nb, Hp, S), lambda n: (n, 0, 0)),
        compiler_params=pltpu.CompilerParams(
            dimension_semantics=("parallel",),
            vmem_limit_bytes=32 * 1024 * 1024,
        ),
    )(w_flat, xp)

    # --- Unpack back to NCHW.
    out = out_packed[:, :H, :G * W].reshape(npack, H, G, W).transpose(0, 2, 1, 3)
    out = out.reshape(Np, H, W)[:N]
    return out[:, None, :, :]


def _reference(x_nchw, weights, num_sequences, ops_per_sequence):
    """Pure-JAX/XLA reference (unscaled weights, explicit x+x structure)."""
    x = x_nchw
    for seq in range(num_sequences):
        for op in range(ops_per_sequence):
            w = weights[seq * ops_per_sequence + op]     # (1, 1, 3, 3)
            x = lax.conv_general_dilated(
                x, w, window_strides=(1, 1), padding=((1, 1), (1, 1)),
                dimension_numbers=("NCHW", "OIHW", "NCHW"),
                precision=lax.Precision.HIGHEST)
        x = x + x
    return x + x


if __name__ == "__main__":
    key = jax.random.PRNGKey(0)
    kx, kw = jax.random.split(key)

    N, C, H, W = 2, 1, 16, 16
    num_ops = NUM_SEQUENCES * OPS_PER_SEQUENCE

    x = jax.random.normal(kx, (N, C, H, W), dtype=jnp.float32)
    # Conv weights (num_ops, out=1, in=1, 3, 3), scaled like PyTorch's
    # kaiming-uniform bound 1/sqrt(in_ch*3*3) = 1/3.
    weights = (jax.random.uniform(kw, (num_ops, 1, 1, 3, 3), dtype=jnp.float32,
                                  minval=-1.0, maxval=1.0) / 3.0)

    out = op_sequences_add_conv2d(x, weights)
    out = jax.block_until_ready(out)

    ref = _reference(x, weights, NUM_SEQUENCES, OPS_PER_SEQUENCE)
    assert out.shape == ref.shape == (N, C, H, W)
    assert jnp.allclose(out, ref, atol=1e-3, rtol=1e-3), "mismatch vs reference"

    print("KERNEL_OK")
</pallas_src>

<mosaic_0001>
module attributes {stable_mosaic.version = 11 : i64} {
  func.func @_op_sequences_kernel(%arg0: i32, %arg1: memref<54xf32, #tpu.memory_space<smem>>, %arg2: memref<1x16x128xf32, #tpu.memory_space<vmem>>, %arg3: memref<1x16x128xf32, #tpu.memory_space<vmem>>) attributes {dimension_semantics = [#tpu.dimension_semantics<parallel>], iteration_bounds = array<i64: 1>, scalar_prefetch = 0 : i64, scratch_operands = 0 : i64, tpu.core_type = #tpu.core_type<tc>, window_params = [{transform_indices = @transform_0, window_bounds = array<i64: 54>}, {transform_indices = @transform_1, window_bounds = array<i64: 1, 16, 128>}, {transform_indices = @transform_2, window_bounds = array<i64: 1, 16, 128>}]} {
    %c0 = arith.constant 0 : index
    %c0_0 = arith.constant 0 : index
    %c0_1 = arith.constant 0 : index
    %0 = vector.load %arg2[%c0, %c0_0, %c0_1] : memref<1x16x128xf32, #tpu.memory_space<vmem>>, vector<1x16x128xf32>
    %1 = tpu.iota {dimensions = array<i32: 1>} : vector<1x16x128xi32>
    %2 = tpu.iota {dimensions = array<i32: 2>} : vector<1x16x128xi32>
    %c0_i32 = arith.constant 0 : i32
    %3 = vector.broadcast %c0_i32 : i32 to vector<1x16x128xi32>
    %4 = arith.cmpi sgt, %1, %3 : vector<1x16x128xi32>
    %c15_i32 = arith.constant 15 : i32
    %5 = vector.broadcast %c15_i32 : i32 to vector<1x16x128xi32>
    %6 = arith.cmpi slt, %1, %5 : vector<1x16x128xi32>
    %c0_i32_2 = arith.constant 0 : i32
    %7 = vector.broadcast %c0_i32_2 : i32 to vector<1x16x128xi32>
    %8 = arith.cmpi eq, %2, %7 : vector<1x16x128xi32>
    %c15_i32_3 = arith.constant 15 : i32
    %9 = vector.broadcast %c15_i32_3 : i32 to vector<1x16x128xi32>
    %10 = arith.cmpi eq, %2, %9 : vector<1x16x128xi32>
    %c16_i32 = arith.constant 16 : i32
    %11 = vector.broadcast %c16_i32 : i32 to vector<1x16x128xi32>
    %12 = arith.cmpi eq, %2, %11 : vector<1x16x128xi32>
    %13 = arith.ori %8, %12 : vector<1x16x128xi1>
    %c31_i32 = arith.constant 31 : i32
    %14 = vector.broadcast %c31_i32 : i32 to vector<1x16x128xi32>
    %15 = arith.cmpi eq, %2, %14 : vector<1x16x128xi32>
    %16 = arith.ori %10, %15 : vector<1x16x128xi1>
    %cst = arith.constant dense<true> : vector<1x16x128xi1>
    %17 = arith.xori %13, %cst : vector<1x16x128xi1>
    %cst_4 = arith.constant dense<true> : vector<1x16x128xi1>
    %18 = arith.xori %16, %cst_4 : vector<1x16x128xi1>
    %cst_5 = arith.constant 0.000000e+00 : f32
    %19 = vector.broadcast %cst_5 : f32 to vector<1x16x128xf32>
    %c0_6 = arith.constant 0 : index
    %20 = memref.load %arg1[%c0_6] : memref<54xf32, #tpu.memory_space<smem>>
    %c1 = arith.constant 1 : index
    %21 = memref.load %arg1[%c1] : memref<54xf32, #tpu.memory_space<smem>>
    %c2 = arith.constant 2 : index
    %22 = memref.load %arg1[%c2] : memref<54xf32, #tpu.memory_space<smem>>
    %c3 = arith.constant 3 : index
    %23 = memref.load %arg1[%c3] : memref<54xf32, #tpu.memory_space<smem>>
    %c4 = arith.constant 4 : index
    %24 = memref.load %arg1[%c4] : memref<54xf32, #tpu.memory_space<smem>>
    %c5 = arith.constant 5 : index
    %25 = memref.load %arg1[%c5] : memref<54xf32, #tpu.memory_space<smem>>
    %c6 = arith.constant 6 : index
    %26 = memref.load %arg1[%c6] : memref<54xf32, #tpu.memory_space<smem>>
    %c7 = arith.constant 7 : index
    %27 = memref.load %arg1[%c7] : memref<54xf32, #tpu.memory_space<smem>>
    %c8 = arith.constant 8 : index
    %28 = memref.load %arg1[%c8] : memref<54xf32, #tpu.memory_space<smem>>
    %c1_i32 = arith.constant 1 : i32
    %29 = tpu.dynamic_rotate %0 by %c1_i32 dim 1 : vector<1x16x128xf32>, i32 -> vector<1x16x128xf32>
    %30 = arith.select %4, %29, %19 : vector<1x16x128xi1>, vector<1x16x128xf32>
    %c15_i32_7 = arith.constant 15 : i32
    %31 = tpu.dynamic_rotate %0 by %c15_i32_7 dim 1 : vector<1x16x128xf32>, i32 -> vector<1x16x128xf32>
    %32 = arith.select %6, %31, %19 : vector<1x16x128xi1>, vector<1x16x128xf32>
    %33 = vector.broadcast %20 : f32 to vector<1x16x128xf32>
    %34 = arith.mulf %33, %30 : vector<1x16x128xf32>
    %35 = vector.broadcast %23 : f32 to vector<1x16x128xf32>
    %36 = arith.mulf %35, %0 : vector<1x16x128xf32>
    %37 = arith.addf %34, %36 : vector<1x16x128xf32>
    %38 = vector.broadcast %26 : f32 to vector<1x16x128xf32>
    %39 = arith.mulf %38, %32 : vector<1x16x128xf32>
    %40 = arith.addf %37, %39 : vector<1x16x128xf32>
    %41 = vector.broadcast %21 : f32 to vector<1x16x128xf32>
    %42 = arith.mulf %41, %30 : vector<1x16x128xf32>
    %43 = vector.broadcast %24 : f32 to vector<1x16x128xf32>
    %44 = arith.mulf %43, %0 : vector<1x16x128xf32>
    %45 = arith.addf %42, %44 : vector<1x16x128xf32>
    %46 = vector.broadcast %27 : f32 to vector<1x16x128xf32>
    %47 = arith.mulf %46, %32 : vector<1x16x128xf32>
    %48 = arith.addf %45, %47 : vector<1x16x128xf32>
    %49 = vector.broadcast %22 : f32 to vector<1x16x128xf32>
    %50 = arith.mulf %49, %30 : vector<1x16x128xf32>
    %51 = vector.broadcast %25 : f32 to vector<1x16x128xf32>
    %52 = arith.mulf %51, %0 : vector<1x16x128xf32>
    %53 = arith.addf %50, %52 : vector<1x16x128xf32>
    %54 = vector.broadcast %28 : f32 to vector<1x16x128xf32>
    %55 = arith.mulf %54, %32 : vector<1x16x128xf32>
    %56 = arith.addf %53, %55 : vector<1x16x128xf32>
    %c1_i32_8 = arith.constant 1 : i32
    %57 = tpu.dynamic_rotate %40 by %c1_i32_8 dim 2 : vector<1x16x128xf32>, i32 -> vector<1x16x128xf32>
    %58 = arith.select %17, %57, %19 : vector<1x16x128xi1>, vector<1x16x128xf32>
    %c127_i32 = arith.constant 127 : i32
    %59 = tpu.dynamic_rotate %56 by %c127_i32 dim 2 : vector<1x16x128xf32>, i32 -> vector<1x16x128xf32>
    %60 = arith.select %18, %59, %19 : vector<1x16x128xi1>, vector<1x16x128xf32>
    %61 = arith.addf %58, %48 : vector<1x16x128xf32>
    %62 = arith.addf %61, %60 : vector<1x16x128xf32>
    %c9 = arith.constant 9 : index
    %63 = memref.load %arg1[%c9] : memref<54xf32, #tpu.memory_space<smem>>
    %c10 = arith.constant 10 : index
    %64 = memref.load %arg1[%c10] : memref<54xf32, #tpu.memory_space<smem>>
    %c11 = arith.constant 11 : index
    %65 = memref.load %arg1[%c11] : memref<54xf32, #tpu.memory_space<smem>>
    %c12 = arith.constant 12 : index
    %66 = memref.load %arg1[%c12] : memref<54xf32, #tpu.memory_space<smem>>
    %c13 = arith.constant 13 : index
    %67 = memref.load %arg1[%c13] : memref<54xf32, #tpu.memory_space<smem>>
    %c14 = arith.constant 14 : index
    %68 = memref.load %arg1[%c14] : memref<54xf32, #tpu.memory_space<smem>>
    %c15 = arith.constant 15 : index
    %69 = memref.load %arg1[%c15] : memref<54xf32, #tpu.memory_space<smem>>
    %c16 = arith.constant 16 : index
    %70 = memref.load %arg1[%c16] : memref<54xf32, #tpu.memory_space<smem>>
    %c17 = arith.constant 17 : index
    %71 = memref.load %arg1[%c17] : memref<54xf32, #tpu.memory_space<smem>>
    %c1_i32_9 = arith.constant 1 : i32
    %72 = tpu.dynamic_rotate %62 by %c1_i32_9 dim 1 : vector<1x16x128xf32>, i32 -> vector<1x16x128xf32>
    %73 = arith.select %4, %72, %19 : vector<1x16x128xi1>, vector<1x16x128xf32>
    %c15_i32_10 = arith.constant 15 : i32
    %74 = tpu.dynamic_rotate %62 by %c15_i32_10 dim 1 : vector<1x16x128xf32>, i32 -> vector<1x16x128xf32>
    %75 = arith.select %6, %74, %19 : vector<1x16x128xi1>, vector<1x16x128xf32>
    %76 = vector.broadcast %63 : f32 to vector<1x16x128xf32>
    %77 = arith.mulf %76, %73 : vector<1x16x128xf32>
    %78 = vector.broadcast %66 : f32 to vector<1x16x128xf32>
    %79 = arith.mulf %78, %62 : vector<1x16x128xf32>
    %80 = arith.addf %77, %79 : vector<1x16x128xf32>
    %81 = vector.broadcast %69 : f32 to vector<1x16x128xf32>
    %82 = arith.mulf %81, %75 : vector<1x16x128xf32>
    %83 = arith.addf %80, %82 : vector<1x16x128xf32>
    %84 = vector.broadcast %64 : f32 to vector<1x16x128xf32>
    %85 = arith.mulf %84, %73 : vector<1x16x128xf32>
    %86 = vector.broadcast %67 : f32 to vector<1x16x128xf32>
    %87 = arith.mulf %86, %62 : vector<1x16x128xf32>
    %88 = arith.addf %85, %87 : vector<1x16x128xf32>
    %89 = vector.broadcast %70 : f32 to vector<1x16x128xf32>
    %90 = arith.mulf %89, %75 : vector<1x16x128xf32>
    %91 = arith.addf %88, %90 : vector<1x16x128xf32>
    %92 = vector.broadcast %65 : f32 to vector<1x16x128xf32>
    %93 = arith.mulf %92, %73 : vector<1x16x128xf32>
    %94 = vector.broadcast %68 : f32 to vector<1x16x128xf32>
    %95 = arith.mulf %94, %62 : vector<1x16x128xf32>
    %96 = arith.addf %93, %95 : vector<1x16x128xf32>
    %97 = vector.broadcast %71 : f32 to vector<1x16x128xf32>
    %98 = arith.mulf %97, %75 : vector<1x16x128xf32>
    %99 = arith.addf %96, %98 : vector<1x16x128xf32>
    %c1_i32_11 = arith.constant 1 : i32
    %100 = tpu.dynamic_rotate %83 by %c1_i32_11 dim 2 : vector<1x16x128xf32>, i32 -> vector<1x16x128xf32>
    %101 = arith.select %17, %100, %19 : vector<1x16x128xi1>, vector<1x16x128xf32>
    %c127_i32_12 = arith.constant 127 : i32
    %102 = tpu.dynamic_rotate %99 by %c127_i32_12 dim 2 : vector<1x16x128xf32>, i32 -> vector<1x16x128xf32>
    %103 = arith.select %18, %102, %19 : vector<1x16x128xi1>, vector<1x16x128xf32>
    %104 = arith.addf %101, %91 : vector<1x16x128xf32>
    %105 = arith.addf %104, %103 : vector<1x16x128xf32>
    %c18 = arith.constant 18 : index
    %106 = memref.load %arg1[%c18] : memref<54xf32, #tpu.memory_space<smem>>
    %c19 = arith.constant 19 : index
    %107 = memref.load %arg1[%c19] : memref<54xf32, #tpu.memory_space<smem>>
    %c20 = arith.constant 20 : index
    %108 = memref.load %arg1[%c20] : memref<54xf32, #tpu.memory_space<smem>>
    %c21 = arith.constant 21 : index
    %109 = memref.load %arg1[%c21] : memref<54xf32, #tpu.memory_space<smem>>
    %c22 = arith.constant 22 : index
    %110 = memref.load %arg1[%c22] : memref<54xf32, #tpu.memory_space<smem>>
    %c23 = arith.constant 23 : index
    %111 = memref.load %arg1[%c23] : memref<54xf32, #tpu.memory_space<smem>>
    %c24 = arith.constant 24 : index
    %112 = memref.load %arg1[%c24] : memref<54xf32, #tpu.memory_space<smem>>
    %c25 = arith.constant 25 : index
    %113 = memref.load %arg1[%c25] : memref<54xf32, #tpu.memory_space<smem>>
    %c26 = arith.constant 26 : index
    %114 = memref.load %arg1[%c26] : memref<54xf32, #tpu.memory_space<smem>>
    %c1_i32_13 = arith.constant 1 : i32
    %115 = tpu.dynamic_rotate %105 by %c1_i32_13 dim 1 : vector<1x16x128xf32>, i32 -> vector<1x16x128xf32>
    %116 = arith.select %4, %115, %19 : vector<1x16x128xi1>, vector<1x16x128xf32>
    %c15_i32_14 = arith.constant 15 : i32
    %117 = tpu.dynamic_rotate %105 by %c15_i32_14 dim 1 : vector<1x16x128xf32>, i32 -> vector<1x16x128xf32>
    %118 = arith.select %6, %117, %19 : vector<1x16x128xi1>, vector<1x16x128xf32>
    %119 = vector.broadcast %106 : f32 to vector<1x16x128xf32>
    %120 = arith.mulf %119, %116 : vector<1x16x128xf32>
    %121 = vector.broadcast %109 : f32 to vector<1x16x128xf32>
    %122 = arith.mulf %121, %105 : vector<1x16x128xf32>
    %123 = arith.addf %120, %122 : vector<1x16x128xf32>
    %124 = vector.broadcast %112 : f32 to vector<1x16x128xf32>
    %125 = arith.mulf %124, %118 : vector<1x16x128xf32>
    %126 = arith.addf %123, %125 : vector<1x16x128xf32>
    %127 = vector.broadcast %107 : f32 to vector<1x16x128xf32>
    %128 = arith.mulf %127, %116 : vector<1x16x128xf32>
    %129 = vector.broadcast %110 : f32 to vector<1x16x128xf32>
    %130 = arith.mulf %129, %105 : vector<1x16x128xf32>
    %131 = arith.addf %128, %130 : vector<1x16x128xf32>
    %132 = vector.broadcast %113 : f32 to vector<1x16x128xf32>
    %133 = arith.mulf %132, %118 : vector<1x16x128xf32>
    %134 = arith.addf %131, %133 : vector<1x16x128xf32>
    %135 = vector.broadcast %108 : f32 to vector<1x16x128xf32>
    %136 = arith.mulf %135, %116 : vector<1x16x128xf32>
    %137 = vector.broadcast %111 : f32 to vector<1x16x128xf32>
    %138 = arith.mulf %137, %105 : vector<1x16x128xf32>
    %139 = arith.addf %136, %138 : vector<1x16x128xf32>
    %140 = vector.broadcast %114 : f32 to vector<1x16x128xf32>
    %141 = arith.mulf %140, %118 : vector<1x16x128xf32>
    %142 = arith.addf %139, %141 : vector<1x16x128xf32>
    %c1_i32_15 = arith.constant 1 : i32
    %143 = tpu.dynamic_rotate %126 by %c1_i32_15 dim 2 : vector<1x16x128xf32>, i32 -> vector<1x16x128xf32>
    %144 = arith.select %17, %143, %19 : vector<1x16x128xi1>, vector<1x16x128xf32>
    %c127_i32_16 = arith.constant 127 : i32
    %145 = tpu.dynamic_rotate %142 by %c127_i32_16 dim 2 : vector<1x16x128xf32>, i32 -> vector<1x16x128xf32>
    %146 = arith.select %18, %145, %19 : vector<1x16x128xi1>, vector<1x16x128xf32>
    %147 = arith.addf %144, %134 : vector<1x16x128xf32>
    %148 = arith.addf %147, %146 : vector<1x16x128xf32>
    %c27 = arith.constant 27 : index
    %149 = memref.load %arg1[%c27] : memref<54xf32, #tpu.memory_space<smem>>
    %c28 = arith.constant 28 : index
    %150 = memref.load %arg1[%c28] : memref<54xf32, #tpu.memory_space<smem>>
    %c29 = arith.constant 29 : index
    %151 = memref.load %arg1[%c29] : memref<54xf32, #tpu.memory_space<smem>>
    %c30 = arith.constant 30 : index
    %152 = memref.load %arg1[%c30] : memref<54xf32, #tpu.memory_space<smem>>
    %c31 = arith.constant 31 : index
    %153 = memref.load %arg1[%c31] : memref<54xf32, #tpu.memory_space<smem>>
    %c32 = arith.constant 32 : index
    %154 = memref.load %arg1[%c32] : memref<54xf32, #tpu.memory_space<smem>>
    %c33 = arith.constant 33 : index
    %155 = memref.load %arg1[%c33] : memref<54xf32, #tpu.memory_space<smem>>
    %c34 = arith.constant 34 : index
    %156 = memref.load %arg1[%c34] : memref<54xf32, #tpu.memory_space<smem>>
    %c35 = arith.constant 35 : index
    %157 = memref.load %arg1[%c35] : memref<54xf32, #tpu.memory_space<smem>>
    %c1_i32_17 = arith.constant 1 : i32
    %158 = tpu.dynamic_rotate %148 by %c1_i32_17 dim 1 : vector<1x16x128xf32>, i32 -> vector<1x16x128xf32>
    %159 = arith.select %4, %158, %19 : vector<1x16x128xi1>, vector<1x16x128xf32>
    %c15_i32_18 = arith.constant 15 : i32
    %160 = tpu.dynamic_rotate %148 by %c15_i32_18 dim 1 : vector<1x16x128xf32>, i32 -> vector<1x16x128xf32>
    %161 = arith.select %6, %160, %19 : vector<1x16x128xi1>, vector<1x16x128xf32>
    %162 = vector.broadcast %149 : f32 to vector<1x16x128xf32>
    %163 = arith.mulf %162, %159 : vector<1x16x128xf32>
    %164 = vector.broadcast %152 : f32 to vector<1x16x128xf32>
    %165 = arith.mulf %164, %148 : vector<1x16x128xf32>
    %166 = arith.addf %163, %165 : vector<1x16x128xf32>
    %167 = vector.broadcast %155 : f32 to vector<1x16x128xf32>
    %168 = arith.mulf %167, %161 : vector<1x16x128xf32>
    %169 = arith.addf %166, %168 : vector<1x16x128xf32>
    %170 = vector.broadcast %150 : f32 to vector<1x16x128xf32>
    %171 = arith.mulf %170, %159 : vector<1x16x128xf32>
    %172 = vector.broadcast %153 : f32 to vector<1x16x128xf32>
    %173 = arith.mulf %172, %148 : vector<1x16x128xf32>
    %174 = arith.addf %171, %173 : vector<1x16x128xf32>
    %175 = vector.broadcast %156 : f32 to vector<1x16x128xf32>
    %176 = arith.mulf %175, %161 : vector<1x16x128xf32>
    %177 = arith.addf %174, %176 : vector<1x16x128xf32>
    %178 = vector.broadcast %151 : f32 to vector<1x16x128xf32>
    %179 = arith.mulf %178, %159 : vector<1x16x128xf32>
    %180 = vector.broadcast %154 : f32 to vector<1x16x128xf32>
    %181 = arith.mulf %180, %148 : vector<1x16x128xf32>
    %182 = arith.addf %179, %181 : vector<1x16x128xf32>
    %183 = vector.broadcast %157 : f32 to vector<1x16x128xf32>
    %184 = arith.mulf %183, %161 : vector<1x16x128xf32>
    %185 = arith.addf %182, %184 : vector<1x16x128xf32>
    %c1_i32_19 = arith.constant 1 : i32
    %186 = tpu.dynamic_rotate %169 by %c1_i32_19 dim 2 : vector<1x16x128xf32>, i32 -> vector<1x16x128xf32>
    %187 = arith.select %17, %186, %19 : vector<1x16x128xi1>, vector<1x16x128xf32>
    %c127_i32_20 = arith.constant 127 : i32
    %188 = tpu.dynamic_rotate %185 by %c127_i32_20 dim 2 : vector<1x16x128xf32>, i32 -> vector<1x16x128xf32>
    %189 = arith.select %18, %188, %19 : vector<1x16x128xi1>, vector<1x16x128xf32>
    %190 = arith.addf %187, %177 : vector<1x16x128xf32>
    %191 = arith.addf %190, %189 : vector<1x16x128xf32>
    %c36 = arith.constant 36 : index
    %192 = memref.load %arg1[%c36] : memref<54xf32, #tpu.memory_space<smem>>
    %c37 = arith.constant 37 : index
    %193 = memref.load %arg1[%c37] : memref<54xf32, #tpu.memory_space<smem>>
    %c38 = arith.constant 38 : index
    %194 = memref.load %arg1[%c38] : memref<54xf32, #tpu.memory_space<smem>>
    %c39 = arith.constant 39 : index
    %195 = memref.load %arg1[%c39] : memref<54xf32, #tpu.memory_space<smem>>
    %c40 = arith.constant 40 : index
    %196 = memref.load %arg1[%c40] : memref<54xf32, #tpu.memory_space<smem>>
    %c41 = arith.constant 41 : index
    %197 = memref.load %arg1[%c41] : memref<54xf32, #tpu.memory_space<smem>>
    %c42 = arith.constant 42 : index
    %198 = memref.load %arg1[%c42] : memref<54xf32, #tpu.memory_space<smem>>
    %c43 = arith.constant 43 : index
    %199 = memref.load %arg1[%c43] : memref<54xf32, #tpu.memory_space<smem>>
    %c44 = arith.constant 44 : index
    %200 = memref.load %arg1[%c44] : memref<54xf32, #tpu.memory_space<smem>>
    %c1_i32_21 = arith.constant 1 : i32
    %201 = tpu.dynamic_rotate %191 by %c1_i32_21 dim 1 : vector<1x16x128xf32>, i32 -> vector<1x16x128xf32>
    %202 = arith.select %4, %201, %19 : vector<1x16x128xi1>, vector<1x16x128xf32>
    %c15_i32_22 = arith.constant 15 : i32
    %203 = tpu.dynamic_rotate %191 by %c15_i32_22 dim 1 : vector<1x16x128xf32>, i32 -> vector<1x16x128xf32>
    %204 = arith.select %6, %203, %19 : vector<1x16x128xi1>, vector<1x16x128xf32>
    %205 = vector.broadcast %192 : f32 to vector<1x16x128xf32>
    %206 = arith.mulf %205, %202 : vector<1x16x128xf32>
    %207 = vector.broadcast %195 : f32 to vector<1x16x128xf32>
    %208 = arith.mulf %207, %191 : vector<1x16x128xf32>
    %209 = arith.addf %206, %208 : vector<1x16x128xf32>
    %210 = vector.broadcast %198 : f32 to vector<1x16x128xf32>
    %211 = arith.mulf %210, %204 : vector<1x16x128xf32>
    %212 = arith.addf %209, %211 : vector<1x16x128xf32>
    %213 = vector.broadcast %193 : f32 to vector<1x16x128xf32>
    %214 = arith.mulf %213, %202 : vector<1x16x128xf32>
    %215 = vector.broadcast %196 : f32 to vector<1x16x128xf32>
    %216 = arith.mulf %215, %191 : vector<1x16x128xf32>
    %217 = arith.addf %214, %216 : vector<1x16x128xf32>
    %218 = vector.broadcast %199 : f32 to vector<1x16x128xf32>
    %219 = arith.mulf %218, %204 : vector<1x16x128xf32>
    %220 = arith.addf %217, %219 : vector<1x16x128xf32>
    %221 = vector.broadcast %194 : f32 to vector<1x16x128xf32>
    %222 = arith.mulf %221, %202 : vector<1x16x128xf32>
    %223 = vector.broadcast %197 : f32 to vector<1x16x128xf32>
    %224 = arith.mulf %223, %191 : vector<1x16x128xf32>
    %225 = arith.addf %222, %224 : vector<1x16x128xf32>
    %226 = vector.broadcast %200 : f32 to vector<1x16x128xf32>
    %227 = arith.mulf %226, %204 : vector<1x16x128xf32>
    %228 = arith.addf %225, %227 : vector<1x16x128xf32>
    %c1_i32_23 = arith.constant 1 : i32
    %229 = tpu.dynamic_rotate %212 by %c1_i32_23 dim 2 : vector<1x16x128xf32>, i32 -> vector<1x16x128xf32>
    %230 = arith.select %17, %229, %19 : vector<1x16x128xi1>, vector<1x16x128xf32>
    %c127_i32_24 = arith.constant 127 : i32
    %231 = tpu.dynamic_rotate %228 by %c127_i32_24 dim 2 : vector<1x16x128xf32>, i32 -> vector<1x16x128xf32>
    %232 = arith.select %18, %231, %19 : vector<1x16x128xi1>, vector<1x16x128xf32>
    %233 = arith.addf %230, %220 : vector<1x16x128xf32>
    %234 = arith.addf %233, %232 : vector<1x16x128xf32>
    %c45 = arith.constant 45 : index
    %235 = memref.load %arg1[%c45] : memref<54xf32, #tpu.memory_space<smem>>
    %c46 = arith.constant 46 : index
    %236 = memref.load %arg1[%c46] : memref<54xf32, #tpu.memory_space<smem>>
    %c47 = arith.constant 47 : index
    %237 = memref.load %arg1[%c47] : memref<54xf32, #tpu.memory_space<smem>>
    %c48 = arith.constant 48 : index
    %238 = memref.load %arg1[%c48] : memref<54xf32, #tpu.memory_space<smem>>
    %c49 = arith.constant 49 : index
    %239 = memref.load %arg1[%c49] : memref<54xf32, #tpu.memory_space<smem>>
    %c50 = arith.constant 50 : index
    %240 = memref.load %arg1[%c50] : memref<54xf32, #tpu.memory_space<smem>>
    %c51 = arith.constant 51 : index
    %241 = memref.load %arg1[%c51] : memref<54xf32, #tpu.memory_space<smem>>
    %c52 = arith.constant 52 : index
    %242 = memref.load %arg1[%c52] : memref<54xf32, #tpu.memory_space<smem>>
    %c53 = arith.constant 53 : index
    %243 = memref.load %arg1[%c53] : memref<54xf32, #tpu.memory_space<smem>>
    %c1_i32_25 = arith.constant 1 : i32
    %244 = tpu.dynamic_rotate %234 by %c1_i32_25 dim 1 : vector<1x16x128xf32>, i32 -> vector<1x16x128xf32>
    %245 = arith.select %4, %244, %19 : vector<1x16x128xi1>, vector<1x16x128xf32>
    %c15_i32_26 = arith.constant 15 : i32
    %246 = tpu.dynamic_rotate %234 by %c15_i32_26 dim 1 : vector<1x16x128xf32>, i32 -> vector<1x16x128xf32>
    %247 = arith.select %6, %246, %19 : vector<1x16x128xi1>, vector<1x16x128xf32>
    %248 = vector.broadcast %235 : f32 to vector<1x16x128xf32>
    %249 = arith.mulf %248, %245 : vector<1x16x128xf32>
    %250 = vector.broadcast %238 : f32 to vector<1x16x128xf32>
    %251 = arith.mulf %250, %234 : vector<1x16x128xf32>
    %252 = arith.addf %249, %251 : vector<1x16x128xf32>
    %253 = vector.broadcast %241 : f32 to vector<1x16x128xf32>
    %254 = arith.mulf %253, %247 : vector<1x16x128xf32>
    %255 = arith.addf %252, %254 : vector<1x16x128xf32>
    %256 = vector.broadcast %236 : f32 to vector<1x16x128xf32>
    %257 = arith.mulf %256, %245 : vector<1x16x128xf32>
    %258 = vector.broadcast %239 : f32 to vector<1x16x128xf32>
    %259 = arith.mulf %258, %234 : vector<1x16x128xf32>
    %260 = arith.addf %257, %259 : vector<1x16x128xf32>
    %261 = vector.broadcast %242 : f32 to vector<1x16x128xf32>
    %262 = arith.mulf %261, %247 : vector<1x16x128xf32>
    %263 = arith.addf %260, %262 : vector<1x16x128xf32>
    %264 = vector.broadcast %237 : f32 to vector<1x16x128xf32>
    %265 = arith.mulf %264, %245 : vector<1x16x128xf32>
    %266 = vector.broadcast %240 : f32 to vector<1x16x128xf32>
    %267 = arith.mulf %266, %234 : vector<1x16x128xf32>
    %268 = arith.addf %265, %267 : vector<1x16x128xf32>
    %269 = vector.broadcast %243 : f32 to vector<1x16x128xf32>
    %270 = arith.mulf %269, %247 : vector<1x16x128xf32>
    %271 = arith.addf %268, %270 : vector<1x16x128xf32>
    %c1_i32_27 = arith.constant 1 : i32
    %272 = tpu.dynamic_rotate %255 by %c1_i32_27 dim 2 : vector<1x16x128xf32>, i32 -> vector<1x16x128xf32>
    %273 = arith.select %17, %272, %19 : vector<1x16x128xi1>, vector<1x16x128xf32>
    %c127_i32_28 = arith.constant 127 : i32
    %274 = tpu.dynamic_rotate %271 by %c127_i32_28 dim 2 : vector<1x16x128xf32>, i32 -> vector<1x16x128xf32>
    %275 = arith.select %18, %274, %19 : vector<1x16x128xi1>, vector<1x16x128xf32>
    %276 = arith.addf %273, %263 : vector<1x16x128xf32>
    %277 = arith.addf %276, %275 : vector<1x16x128xf32>
    %c0_29 = arith.constant 0 : index
    %c0_30 = arith.constant 0 : index
    %c0_31 = arith.constant 0 : index
    %278 = vector.load %arg3[%c0_29, %c0_30, %c0_31] : memref<1x16x128xf32, #tpu.memory_space<vmem>>, vector<1x16x128xf32>
    tpu.vector_store %arg3[%c0_29, %c0_30, %c0_31], %277 {strides = array<i32>} : memref<1x16x128xf32, #tpu.memory_space<vmem>>, vector<1x16x128xf32>,
    return
  }
  func.func @transform_0(%arg0: i32) -> i32 {
    %c0_i32 = arith.constant 0 : i32
    %c0_i32_0 = arith.constant 0 : i32
    return %c0_i32 : i32
  }
  func.func @transform_1(%arg0: i32) -> (i32, i32, i32) {
    %c0_i32 = arith.constant 0 : i32
    %c0_i32_0 = arith.constant 0 : i32
    %c0_i32_1 = arith.constant 0 : i32
    return %arg0, %c0_i32, %c0_i32_0 : i32, i32, i32
  }
  func.func @transform_2(%arg0: i32) -> (i32, i32, i32) {
    %c0_i32 = arith.constant 0 : i32
    %c0_i32_0 = arith.constant 0 : i32
    %c0_i32_1 = arith.constant 0 : i32
    return %arg0, %c0_i32, %c0_i32_0 : i32, i32, i32
  }
}

</mosaic_0001>

<bundles_post_ra>
// kernel: tpu_custom_call.1
= control target key start
LH: loop header
LB: loop body
LE: loop exit
PB: predicated region body
PF: predicated region fallthrough
CT: control target
= control target key end

     0   :  { %7 = vsyncpa [#allocation5], 0  ;;  %s1031_s0 = inlined_call_operand.hbm [shape: f32[54], index: 0, kind: input, shape index: {}]   ;;  %s1032_s1 = inlined_call_operand.hbm [shape: f32[1,16,128], index: 1, kind: input, shape index: {}]   ;;  %s1033_s2 = inlined_call_operand.hbm [shape: f32[1,16,128], index: 2, kind: output, shape index: {}]  }
   0x1   :  { %8 = vsyncpa [#allocation3], 0 }
   0x2   :  { %9 = vsyncpa [#allocation4], 0  ;;  %s15_s11 = sshll.u32 %s1031_s0, 4  ;;  %s23_s14 = sshll.u32 %s1032_s1, 4  ;;  %s16_s11 = int_to_ptr.hbm [resolvable:$true] %s15_s11  ;;  %s24_s14 = int_to_ptr.hbm [resolvable:$true] %s23_s14 }
   0x3   :  { %s667_s15 = smov [#allocation2]   ;;  %s668_s16 = smov [#allocation6]  }
   0x4   :  { %18 = dma.hbm_to_smem %s16_s11, 16, %s667_s15, [#allocation5]  }
   0x5   :  { %s25_s17 = sshll.u32 %s668_s16, 4  ;;  %s669_s18 = smov 128   ;;  %s26_s17 = int_to_ptr.vmem [resolvable:$true] %s25_s17 }
   0x6   :  { %s670_s19 = smov 8  }
   0x7   :  { %31 = dma.hbm_to_vmem [thread:$0]  %s24_s14, 256, %s26_s17, [#allocation3], %s669_s18, %s669_s18, %s670_s19  }
   0x8   :  { %661 = dma.done.wait [#allocation5], 16  }
   0x9   :  { %662 = vsyncadd [#allocation5], 4294967280 }
   0xa   :  { %663 = dma.done.wait [#allocation3], 256  }
   0xb   :  { %664 = vsyncadd [#allocation3], 4294967040 }
   0xc   :  { %40 = sfence }
   0xd   :  { %v41_v0 = vld [vmem:[#allocation6] sm:$0xff]  ;;  %v699_v1 = vld [vmem:[#allocation6 + $0x8] sm:$0xff]  ;;  %v43_v2 = vlaneseq  ;;  %s701_s0 = sld [smem:[#allocation2]]  ;;  %s671_s27 = smov 1   ;;  %vm673_vm9 = vmmov 1  }
   0xe   :  { %s542_s1 = sld [smem:[#allocation2 + $0x3]]  ;;  %v69_v3 = vrot.slane %v41_v0, 7  ;;  %v70_v5 = vrot.slane %v699_v1, 7  ;;  %v76_v6 = vrot.slane %v41_v0, 1  ;;  %v77_v7 = vrot.slane %v699_v1, 1  ;;  %s672_s28 = smov 127  }
   0xf   :  { %v704_v4 = vshrl.u32 %v43_v2, 7  ;;  %s706_s20 = sld [smem:[#allocation2 + $0x6]]  ;;  %v47_v49 = vand.u32 127, %v43_v2 }
  0x10   :  { %s710_s21 = sld [smem:[#allocation2 + $0x2]] }
  0x11   :  { %v713_v8 = vadd.s32 8, %v704_v4  ;;  %vm48_vm0 = vcmp.gt.s32.totalorder %v704_v4, 0  ;;  %s544_s22 = sld [smem:[#allocation2 + $0x5]]  ;;  %vm71_vm1 = vcmp.lt.s32.totalorder %v704_v4, 1  ;;  %vm78_vm2 = vcmp.lt.s32.totalorder %v704_v4, 7 }
  0x12   :  { %s718_s23 = sld [smem:[#allocation2 + $0x8]]  ;;  %v73_v9 = vsel %vm71_vm1, %v70_v5, %v69_v3  ;;  %v79_v10 = vsel %vm78_vm2, %v76_v6, %v77_v7  ;;  %v80_v11 = vsel %vm78_vm2, %v77_v7, %v76_v6  ;;  %v72_v21 = vsel %vm71_vm1, %v69_v3, %v70_v5 }
  0x13   :  { %vm51_vm3 = vcmp.lt.s32.totalorder %v713_v8, 15  ;;  %s727_s24 = sld [smem:[#allocation2 + $0x1]]  ;;  %v74_v12 = vsel %vm48_vm0, %v73_v9, 0.0  ;;  %v83_v13 = vstv %s701_s0  ;;  %vm52_vm4 = vcmp.eq.s32.totalorder %v47_v49, 0 }
  0x14   :  { %v86_v14 = vstv %s542_s1  ;;  %s732_s25 = sld [smem:[#allocation2 + $0x4]]  ;;  %v82_v15 = vsel %vm51_vm3, %v80_v11, 0.0  ;;  %v84_v16 = vmul.f32 %v83_v13, %v74_v12  ;;  %v85_v24 = vmul.f32 %v83_v13, %v72_v21 }
  0x15   :  { %v87_v17 = vmul.f32 %v86_v14, %v41_v0  ;;  %v91_v18 = vstv %s706_s20  ;;  %s737_s26 = sld [smem:[#allocation2 + $0x7]]  ;;  %v88_v19 = vmul.f32 %v86_v14, %v699_v1  ;;  %vm54_vm5 = vcmp.eq.s32.totalorder %v47_v49, 16 }
  0x16   :  { %v92_v20 = vmul.f32 %v91_v18, %v79_v10  ;;  %v109_v22 = vstv %s710_s21  ;;  %v93_v29 = vmul.f32 %v91_v18, %v82_v15  ;;  %vm55_vm6 = vmor %vm52_vm4, %vm54_vm5  ;;  %vm53_vm7 = vcmp.eq.s32.totalorder %v47_v49, 15  ;;  %s754_s29 = sld [smem:[#allocation2 + $0xe]] }
  0x17   :  { %v89_v23 = vadd.f32 %v87_v17, %v84_v16  ;;  %v110_v25 = vmul.f32 %v109_v22, %v74_v12  ;;  %v112_v26 = vstv %s544_s22  ;;  %v111_v34 = vmul.f32 %v109_v22, %v72_v21  ;;  %vm756_vm10 = vmxor %vm55_vm6, %vm673_vm9  ;;  %s760_s30 = sld [smem:[#allocation2 + $0xc]] }
  0x18   :  { %v113_v27 = vmul.f32 %v112_v26, %v41_v0  ;;  %v117_v28 = vstv %s718_s23  ;;  %v114_v31 = vmul.f32 %v112_v26, %v699_v1  ;;  %v90_v37 = vadd.f32 %v88_v19, %v85_v24  ;;  %s762_s3 = sld [smem:[#allocation2 + $0xb]] }
  0x19   :  { %v94_v30 = vadd.f32 %v92_v20, %v89_v23  ;;  %v118_v32 = vmul.f32 %v117_v28, %v79_v10  ;;  %v96_v35 = vstv %s727_s24  ;;  %v119_v44 = vmul.f32 %v117_v28, %v82_v15  ;;  %s764_s4 = sld [smem:[#allocation2 + $0x11]] }
  0x1a   :  { %v115_v33 = vadd.f32 %v113_v27, %v110_v25  ;;  %v99_v36 = vstv %s732_s25  ;;  %v97_v38 = vmul.f32 %v96_v35, %v74_v12  ;;  %v116_v45 = vadd.f32 %v114_v31, %v111_v34  ;;  %s768_s5 = sld [smem:[#allocation2 + $0x9]] }
  0x1b   :  { %122 = vrot.lane.b32.xlu0 %v94_v30, %s671_s27  ;;  %v100_v39 = vmul.f32 %v99_v36, %v41_v0  ;;  %v104_v40 = vstv %s737_s26  ;;  %v95_v46 = vadd.f32 %v93_v29, %v90_v37  ;;  %v98_v50 = vmul.f32 %v96_v35, %v72_v21  ;;  %s774_s6 = sld [smem:[#allocation2 + $0xd]] }
  0x1c   :  { %v120_v41 = vadd.f32 %v118_v32, %v115_v33  ;;  %v105_v42 = vmul.f32 %v104_v40, %v79_v10  ;;  %v121_v48 = vadd.f32 %v119_v44, %v116_v45  ;;  %v101_v51 = vmul.f32 %v99_v36, %v699_v1  ;;  %s776_s7 = sld [smem:[#allocation2 + $0xf]] }
  0x1d   :  { %v102_v43 = vadd.f32 %v100_v39, %v97_v38  ;;  %vm56_vm8 = vcmp.eq.s32.totalorder %v47_v49, 31  ;;  %v106_v55 = vmul.f32 %v104_v40, %v82_v15  ;;  %s778_s8 = sld [smem:[#allocation2 + $0xa]]  ;;  %v188_v6 = vstv %s754_s29 }
  0x1e   :  { %128 = vrot.lane.b32.xlu1 %v120_v41, %s672_s28  ;;  %vm57_vm11 = vmor %vm53_vm7, %vm56_vm8  ;;  %v103_v54 = vadd.f32 %v101_v51, %v98_v50  ;;  %s782_s9 = sld [smem:[#allocation2 + $0x10]]  ;;  %v162_v7 = vstv %s760_s30  ;;  %v185_v10 = vstv %s762_s3 }
  0x1f   :  { %v107_v47 = vadd.f32 %v105_v42, %v102_v43  ;;  %vm770_vm12 = vmxor %vm57_vm11, %vm673_vm9  ;;  %v193_v11 = vstv %s764_s4  ;;  %s813_s10 = sld [smem:[#allocation2 + $0x15]] }
  0x20   :  { %v108_v59 = vadd.f32 %v106_v55, %v103_v54  ;;  %v159_v12 = vstv %s768_s5  ;;  %s815_s11 = sld [smem:[#allocation2 + $0x17]] }
  0x21   :  { %v175_v9 = vstv %s774_s6  ;;  %s817_s12 = sld [smem:[#allocation2 + $0x16]] }
  0x22   :  { %v167_v13 = vstv %s776_s7  ;;  %s819_s13 = sld [smem:[#allocation2 + $0x12]] }
  0x23   :  { %124 = vrot.lane.b32.xlu0 %v95_v46, %s671_s27  ;;  %v172_v20 = vstv %s778_s8  ;;  %s821_s14 = sld [smem:[#allocation2 + $0x18]] }
  0x24   :  { %v180_v21 = vstv %s782_s9  ;;  %s823_s15 = sld [smem:[#allocation2 + $0x14]] }
  0x25   :  { %s825_s16 = sld [smem:[#allocation2 + $0x1a]] }
  0x26   :  { %130 = vrot.lane.b32.xlu1 %v121_v48, %s672_s28  ;;  %s827_s17 = sld [smem:[#allocation2 + $0x13]] }
  0x27   :  { %s829_s0 = sld [smem:[#allocation2 + $0x19]] }
  0x28   :  { %s864_s1 = sld [smem:[#allocation2 + $0x1e]] }
  0x29   :  { %s866_s20 = sld [smem:[#allocation2 + $0x20]] }
  0x2a   :  { %s868_s21 = sld [smem:[#allocation2 + $0x1f]] }
  0x2b   :  { %s870_s22 = sld [smem:[#allocation2 + $0x1b]] }
  0x2c   :  { %s872_s23 = sld [smem:[#allocation2 + $0x21]] }
  0x2d   :  { %s874_s24 = sld [smem:[#allocation2 + $0x1d]] }
  0x2e   :  { %s876_s25 = sld [smem:[#allocation2 + $0x23]] }
  0x2f   :  { %s878_s26 = sld [smem:[#allocation2 + $0x1c]] }
  0x30   :  { %s880_s29 = sld [smem:[#allocation2 + $0x22]] }
  0x31   :  { %s915_s30 = sld [smem:[#allocation2 + $0x27]] }
  0x32   :  { %s917_s3 = sld [smem:[#allocation2 + $0x29]] }
  0x33   :  { %s919_s4 = sld [smem:[#allocation2 + $0x28]] }
  0x34   :  { %s921_s5 = sld [smem:[#allocation2 + $0x24]] }
  0x35   :  { %s923_s6 = sld [smem:[#allocation2 + $0x2a]] }
  0x36   :  { %s925_s7 = sld [smem:[#allocation2 + $0x26]] }
  0x37   :  { %s929_s8 = sld [smem:[#allocation2 + $0x2c]] }
  0x38   :  { %s931_s9 = sld [smem:[#allocation2 + $0x25]] }
  0x8d   :  { %v123_v52 = vpop.permute.xlu0 %122 }
  0x8e   :  { %v126_v57 = vsel %vm756_vm10, %v123_v52, 0.0 }
  0x8f   :  { %v134_v60 = vadd.f32 %v126_v57, %v107_v47 }
  0x90   :  { %v129_v56 = vpop.permute.xlu1 %128 }
  0x91   :  { %v132_v61 = vsel %vm770_vm12, %v129_v56, 0.0 }
  0x92   :  { %v136_v1 = vadd.f32 %v134_v60, %v132_v61 }
  0x94   :  { %v147_v14 = vrot.slane %v136_v1, 7  ;;  %v153_v16 = vrot.slane %v136_v1, 1  ;;  %v189_v18 = vmul.f32 %v188_v6, %v136_v1  ;;  %v163_v19 = vmul.f32 %v162_v7, %v136_v1 }
  0x95   :  { %v125_v62 = vpop.permute.xlu0 %124  ;;  %v176_v33 = vmul.f32 %v175_v9, %v136_v1 }
  0x96   :  { %v127_v63 = vsel %vm756_vm10, %v125_v62, 0.0 }
  0x97   :  { %v135_v0 = vadd.f32 %v127_v63, %v108_v59 }
  0x98   :  { %v131_v2 = vpop.permute.xlu1 %130 }
  0x99   :  { %v133_v3 = vsel %vm770_vm12, %v131_v2, 0.0 }
  0x9a   :  { %v137_v5 = vadd.f32 %v135_v0, %v133_v3  ;;  %v238_v3 = vstv %s813_s10  ;;  %s933_s10 = sld [smem:[#allocation2 + $0x2b]] }
  0x9c   :  { %v148_v15 = vrot.slane %v137_v5, 7  ;;  %v154_v17 = vrot.slane %v137_v5, 1  ;;  %v190_v28 = vmul.f32 %v188_v6, %v137_v5  ;;  %v177_v37 = vmul.f32 %v175_v9, %v137_v5 }
  0x9d   :  { %v164_v51 = vmul.f32 %v162_v7, %v137_v5  ;;  %v264_v5 = vstv %s815_s11  ;;  %v235_v9 = vstv %s819_s13  ;;  %s966_s11 = sld [smem:[#allocation2 + $0x30]] }
  0x9e   :  { %v149_v22 = vsel %vm71_vm1, %v147_v14, %v148_v15  ;;  %v156_v23 = vsel %vm78_vm2, %v154_v17, %v153_v16  ;;  %v150_v24 = vsel %vm71_vm1, %v148_v15, %v147_v14  ;;  %v155_v25 = vsel %vm78_vm2, %v153_v16, %v154_v17  ;;  %s970_s13 = sld [smem:[#allocation2 + $0x31]] }
  0x9f   :  { %v158_v26 = vsel %vm51_vm3, %v156_v23, 0.0  ;;  %v187_v27 = vmul.f32 %v185_v10, %v149_v22  ;;  %v151_v29 = vsel %vm48_vm0, %v150_v24, 0.0  ;;  %v194_v35 = vmul.f32 %v193_v11, %v155_v25 }
  0xa0   :  { %v195_v30 = vmul.f32 %v193_v11, %v158_v26  ;;  %v186_v31 = vmul.f32 %v185_v10, %v151_v29  ;;  %v160_v32 = vmul.f32 %v159_v12, %v151_v29  ;;  %v173_v36 = vmul.f32 %v172_v20, %v151_v29 }
  0xa1   :  { %v192_v34 = vadd.f32 %v190_v28, %v187_v27  ;;  %v168_v40 = vmul.f32 %v167_v13, %v155_v25  ;;  %v174_v41 = vmul.f32 %v172_v20, %v149_v22  ;;  %v181_v44 = vmul.f32 %v180_v21, %v155_v25 }
  0xa2   :  { %v191_v38 = vadd.f32 %v189_v18, %v186_v31  ;;  %v165_v39 = vadd.f32 %v163_v19, %v160_v32  ;;  %v178_v43 = vadd.f32 %v176_v33, %v173_v36  ;;  %v182_v45 = vmul.f32 %v180_v21, %v158_v26 }
  0xa3   :  { %v197_v42 = vadd.f32 %v195_v30, %v192_v34  ;;  %v161_v48 = vmul.f32 %v159_v12, %v149_v22  ;;  %v179_v49 = vadd.f32 %v177_v37, %v174_v41  ;;  %v169_v54 = vmul.f32 %v167_v13, %v158_v26 }
  0xa4   :  { %v196_v46 = vadd.f32 %v194_v35, %v191_v38  ;;  %v170_v47 = vadd.f32 %v168_v40, %v165_v39  ;;  %v183_v50 = vadd.f32 %v181_v44, %v178_v43  ;;  %v251_v10 = vstv %s817_s12  ;;  %s968_s12 = sld [smem:[#allocation2 + $0x32]] }
  0xa5   :  { %206 = vrot.lane.b32.xlu1 %v197_v42, %s672_s28  ;;  %v184_v52 = vadd.f32 %v182_v45, %v179_v49  ;;  %v166_v55 = vadd.f32 %v164_v51, %v161_v48  ;;  %v243_v12 = vstv %s821_s14  ;;  %v261_v13 = vstv %s823_s15  ;;  %s972_s14 = sld [smem:[#allocation2 + $0x2d]] }
  0xa6   :  { %204 = vrot.lane.b32.xlu0 %v196_v46, %s672_s28  ;;  %198 = vrot.lane.b32.xlu2 %v170_v47, %s671_s27  ;;  %v269_v14 = vstv %s825_s16  ;;  %v248_v17 = vstv %s827_s17  ;;  %s974_s15 = sld [smem:[#allocation2 + $0x33]] }
  0xa7   :  { %v171_v56 = vadd.f32 %v169_v54, %v166_v55  ;;  %v256_v18 = vstv %s829_s0  ;;  %s976_s16 = sld [smem:[#allocation2 + $0x2f]] }
  0xa8   :  { %s980_s17 = sld [smem:[#allocation2 + $0x35]] }
  0xa9   :  { %s982_s0 = sld [smem:[#allocation2 + $0x2e]] }
  0xae   :  { %200 = vrot.lane.b32.xlu2 %v171_v56, %s671_s27 }
 0x100   :  { %v199_v57 = vpop.permute.xlu2 %198 }
 0x101   :  { %v202_v61 = vsel %vm756_vm10, %v199_v57, 0.0 }
 0x102   :  { %v210_v0 = vadd.f32 %v202_v61, %v183_v50 }
 0x108   :  { %v201_v59 = vpop.permute.xlu2 %200 }
 0x109   :  { %v203_v60 = vsel %vm756_vm10, %v201_v59, 0.0 }
 0x10a   :  { %v211_v62 = vadd.f32 %v203_v60, %v184_v52 }
 0x117   :  { %v207_v63 = vpop.permute.xlu1 %206 }
 0x118   :  { %v209_v1 = vsel %vm770_vm12, %v207_v63, 0.0  ;;  %v205_v2 = vpop.permute.xlu0 %204 }
 0x119   :  { %v213_v6 = vadd.f32 %v211_v62, %v209_v1  ;;  %v208_v7 = vsel %vm770_vm12, %v205_v2, 0.0 }
 0x11a   :  { %v212_v11 = vadd.f32 %v210_v0, %v208_v7 }
 0x11b   :  { %v224_v15 = vrot.slane %v213_v6, 7  ;;  %v230_v16 = vrot.slane %v213_v6, 1  ;;  %v240_v21 = vmul.f32 %v238_v3, %v213_v6  ;;  %v266_v22 = vmul.f32 %v264_v5, %v213_v6 }
 0x11c   :  { %v223_v19 = vrot.slane %v212_v11, 7  ;;  %v229_v20 = vrot.slane %v212_v11, 1  ;;  %v265_v23 = vmul.f32 %v264_v5, %v212_v11  ;;  %v239_v24 = vmul.f32 %v238_v3, %v212_v11 }
 0x11d   :  { %v252_v25 = vmul.f32 %v251_v10, %v212_v11  ;;  %v253_v26 = vmul.f32 %v251_v10, %v213_v6  ;;  %v314_v5 = vstv %s864_s1  ;;  %v340_v6 = vstv %s866_s20  ;;  %s984_s1 = sld [smem:[#allocation2 + $0x34]]  ;;  %s674_s20 = smov [#allocation7]  }
 0x11e   :  { %v225_v27 = vsel %vm71_vm1, %v223_v19, %v224_v15  ;;  %v232_v28 = vsel %vm78_vm2, %v230_v16, %v229_v20  ;;  %v226_v29 = vsel %vm71_vm1, %v224_v15, %v223_v19  ;;  %v231_v30 = vsel %vm78_vm2, %v229_v20, %v230_v16 }
 0x11f   :  { %v234_v31 = vsel %vm51_vm3, %v232_v28, 0.0  ;;  %v237_v32 = vmul.f32 %v235_v9, %v225_v27  ;;  %v227_v33 = vsel %vm48_vm0, %v226_v29, 0.0  ;;  %v270_v34 = vmul.f32 %v269_v14, %v231_v30 }
 0x120   :  { %v245_v35 = vmul.f32 %v243_v12, %v234_v31  ;;  %v262_v36 = vmul.f32 %v261_v13, %v227_v33  ;;  %v236_v37 = vmul.f32 %v235_v9, %v227_v33  ;;  %v244_v38 = vmul.f32 %v243_v12, %v231_v30 }
 0x121   :  { %v242_v39 = vadd.f32 %v240_v21, %v237_v32  ;;  %v263_v40 = vmul.f32 %v261_v13, %v225_v27  ;;  %v271_v41 = vmul.f32 %v269_v14, %v234_v31  ;;  %v249_v42 = vmul.f32 %v248_v17, %v227_v33 }
 0x122   :  { %v267_v43 = vadd.f32 %v265_v23, %v262_v36  ;;  %v241_v44 = vadd.f32 %v239_v24, %v236_v37  ;;  %v257_v45 = vmul.f32 %v256_v18, %v231_v30  ;;  %v250_v46 = vmul.f32 %v248_v17, %v225_v27 }
 0x123   :  { %v247_v47 = vadd.f32 %v245_v35, %v242_v39  ;;  %v268_v48 = vadd.f32 %v266_v22, %v263_v40  ;;  %v254_v49 = vadd.f32 %v252_v25, %v249_v42  ;;  %v258_v50 = vmul.f32 %v256_v18, %v234_v31 }
 0x124   :  { %v272_v51 = vadd.f32 %v270_v34, %v267_v43  ;;  %v246_v52 = vadd.f32 %v244_v38, %v241_v44  ;;  %v255_v54 = vadd.f32 %v253_v26, %v250_v46  ;;  %v311_v10 = vstv %s870_s22 }
 0x125   :  { %276 = vrot.lane.b32.xlu0 %v247_v47, %s671_s27  ;;  %v273_v55 = vadd.f32 %v271_v41, %v268_v48  ;;  %v259_v56 = vadd.f32 %v257_v45, %v254_v49  ;;  %v327_v11 = vstv %s868_s21  ;;  %v319_v13 = vstv %s872_s23  ;;  %s524_s21 = sshll.u32 %s674_s20, 4  ;;  %s525_s21 = int_to_ptr.vmem [resolvable:$true] %s524_s21 }
 0x126   :  { %280 = vrot.lane.b32.xlu1 %v272_v51, %s672_s28  ;;  %274 = vrot.lane.b32.xlu2 %v246_v52, %s671_s27  ;;  %v260_v57 = vadd.f32 %v258_v50, %v255_v54  ;;  %v337_v14 = vstv %s874_s24  ;;  %v345_v15 = vstv %s876_s25 }
 0x127   :  { %v324_v18 = vstv %s878_s26  ;;  %v332_v19 = vstv %s880_s29 }
 0x12e   :  { %282 = vrot.lane.b32.xlu2 %v273_v55, %s672_s28 }
 0x180   :  { %v275_v59 = vpop.permute.xlu2 %274 }
 0x181   :  { %v278_v60 = vsel %vm756_vm10, %v275_v59, 0.0 }
 0x182   :  { %v286_v63 = vadd.f32 %v278_v60, %v259_v56 }
 0x188   :  { %v283_v61 = vpop.permute.xlu2 %282 }
 0x189   :  { %v285_v7 = vsel %vm770_vm12, %v283_v61, 0.0 }
 0x197   :  { %v277_v62 = vpop.permute.xlu0 %276 }
 0x198   :  { %v279_v0 = vsel %vm756_vm10, %v277_v62, 0.0  ;;  %v281_v1 = vpop.permute.xlu1 %280 }
 0x199   :  { %v287_v2 = vadd.f32 %v279_v0, %v260_v57  ;;  %v284_v3 = vsel %vm770_vm12, %v281_v1, 0.0 }
 0x19a   :  { %v288_v9 = vadd.f32 %v286_v63, %v284_v3 }
 0x19b   :  { %v289_v12 = vadd.f32 %v287_v2, %v285_v7  ;;  %v390_v7 = vstv %s915_s30 }
 0x19c   :  { %v299_v16 = vrot.slane %v288_v9, 7  ;;  %v305_v17 = vrot.slane %v288_v9, 1  ;;  %v341_v22 = vmul.f32 %v340_v6, %v288_v9  ;;  %v315_v23 = vmul.f32 %v314_v5, %v288_v9 }
 0x19d   :  { %v300_v20 = vrot.slane %v289_v12, 7  ;;  %v306_v21 = vrot.slane %v289_v12, 1  ;;  %v316_v24 = vmul.f32 %v314_v5, %v289_v12  ;;  %v342_v25 = vmul.f32 %v340_v6, %v289_v12 }
 0x19e   :  { %v329_v26 = vmul.f32 %v327_v11, %v289_v12  ;;  %v328_v27 = vmul.f32 %v327_v11, %v288_v9  ;;  %v416_v11 = vstv %s917_s3  ;;  %v403_v12 = vstv %s919_s4 }
 0x19f   :  { %v301_v28 = vsel %vm71_vm1, %v299_v16, %v300_v20  ;;  %v308_v29 = vsel %vm78_vm2, %v306_v21, %v305_v17  ;;  %v302_v30 = vsel %vm71_vm1, %v300_v20, %v299_v16  ;;  %v307_v31 = vsel %vm78_vm2, %v305_v17, %v306_v21 }
 0x1a0   :  { %v310_v32 = vsel %vm51_vm3, %v308_v29, 0.0  ;;  %v313_v33 = vmul.f32 %v311_v10, %v301_v28  ;;  %v303_v34 = vsel %vm48_vm0, %v302_v30, 0.0  ;;  %v346_v35 = vmul.f32 %v345_v15, %v307_v31 }
 0x1a1   :  { %v321_v36 = vmul.f32 %v319_v13, %v310_v32  ;;  %v338_v37 = vmul.f32 %v337_v14, %v303_v34  ;;  %v312_v38 = vmul.f32 %v311_v10, %v303_v34  ;;  %v320_v39 = vmul.f32 %v319_v13, %v307_v31 }
 0x1a2   :  { %v318_v40 = vadd.f32 %v316_v24, %v313_v33  ;;  %v339_v41 = vmul.f32 %v337_v14, %v301_v28  ;;  %v347_v42 = vmul.f32 %v345_v15, %v310_v32  ;;  %v326_v43 = vmul.f32 %v324_v18, %v301_v28 }
 0x1a3   :  { %v343_v44 = vadd.f32 %v341_v22, %v338_v37  ;;  %v317_v45 = vadd.f32 %v315_v23, %v312_v38  ;;  %v334_v46 = vmul.f32 %v332_v19, %v310_v32  ;;  %v325_v47 = vmul.f32 %v324_v18, %v303_v34 }
 0x1a4   :  { %v323_v48 = vadd.f32 %v321_v36, %v318_v40  ;;  %v344_v49 = vadd.f32 %v342_v25, %v339_v41  ;;  %v331_v50 = vadd.f32 %v329_v26, %v326_v43  ;;  %v333_v55 = vmul.f32 %v332_v19, %v307_v31 }
 0x1a5   :  { %v348_v51 = vadd.f32 %v346_v35, %v343_v44  ;;  %v322_v52 = vadd.f32 %v320_v39, %v317_v45  ;;  %v330_v54 = vadd.f32 %v328_v27, %v325_v47  ;;  %v387_v10 = vstv %s921_s5 }
 0x1a6   :  { %352 = vrot.lane.b32.xlu1 %v323_v48, %s671_s27  ;;  %v349_v56 = vadd.f32 %v347_v42, %v344_v49  ;;  %v336_v57 = vadd.f32 %v334_v46, %v331_v50  ;;  %v395_v14 = vstv %s923_s6  ;;  %v413_v15 = vstv %s925_s7 }
 0x1a7   :  { %356 = vrot.lane.b32.xlu2 %v348_v51, %s672_s28  ;;  %350 = vrot.lane.b32.xlu0 %v322_v52, %s671_s27  ;;  %v335_v59 = vadd.f32 %v333_v55, %v330_v54  ;;  %v421_v16 = vstv %s929_s8  ;;  %v400_v19 = vstv %s931_s9 }
 0x1a8   :  { %v408_v20 = vstv %s933_s10 }
 0x1af   :  { %358 = vrot.lane.b32.xlu0 %v349_v56, %s672_s28 }
 0x201   :  { %v357_v63 = vpop.permute.xlu2 %356 }
 0x202   :  { %v360_v2 = vsel %vm770_vm12, %v357_v63, 0.0 }
 0x218   :  { %v353_v62 = vpop.permute.xlu1 %352 }
 0x219   :  { %v351_v60 = vpop.permute.xlu0 %350  ;;  %v355_v1 = vsel %vm756_vm10, %v353_v62, 0.0 }
 0x21a   :  { %v354_v61 = vsel %vm756_vm10, %v351_v60, 0.0  ;;  %v363_v5 = vadd.f32 %v355_v1, %v336_v57 }
 0x21b   :  { %v362_v0 = vadd.f32 %v354_v61, %v335_v59 }
 0x21d   :  { %v364_v3 = vadd.f32 %v362_v0, %v360_v2 }
 0x21f   :  { %v375_v17 = vrot.slane %v364_v3, 7  ;;  %v381_v18 = vrot.slane %v364_v3, 1  ;;  %v417_v23 = vmul.f32 %v416_v11, %v364_v3  ;;  %v391_v24 = vmul.f32 %v390_v7, %v364_v3 }
 0x220   :  { %v404_v28 = vmul.f32 %v403_v12, %v364_v3 }
 0x221   :  { %v359_v6 = vpop.permute.xlu0 %358 }
 0x222   :  { %v361_v9 = vsel %vm770_vm12, %v359_v6, 0.0 }
 0x223   :  { %v365_v13 = vadd.f32 %v363_v5, %v361_v9  ;;  %v466_v9 = vstv %s966_s11 }
 0x225   :  { %v376_v21 = vrot.slane %v365_v13, 7  ;;  %v382_v22 = vrot.slane %v365_v13, 1  ;;  %v392_v25 = vmul.f32 %v390_v7, %v365_v13  ;;  %v418_v26 = vmul.f32 %v416_v11, %v365_v13 }
 0x226   :  { %v405_v27 = vmul.f32 %v403_v12, %v365_v13  ;;  %v463_v11 = vstv %s972_s14  ;;  %v492_v12 = vstv %s968_s12  ;;  %v479_v13 = vstv %s970_s13 }
 0x227   :  { %v377_v29 = vsel %vm71_vm1, %v375_v17, %v376_v21  ;;  %v384_v30 = vsel %vm78_vm2, %v382_v22, %v381_v18  ;;  %v378_v31 = vsel %vm71_vm1, %v376_v21, %v375_v17  ;;  %v383_v32 = vsel %vm78_vm2, %v381_v18, %v382_v22 }
 0x228   :  { %v386_v33 = vsel %vm51_vm3, %v384_v30, 0.0  ;;  %v389_v34 = vmul.f32 %v387_v10, %v377_v29  ;;  %v379_v35 = vsel %vm48_vm0, %v378_v31, 0.0  ;;  %v422_v36 = vmul.f32 %v421_v16, %v383_v32 }
 0x229   :  { %v397_v37 = vmul.f32 %v395_v14, %v386_v33  ;;  %v414_v38 = vmul.f32 %v413_v15, %v379_v35  ;;  %v388_v39 = vmul.f32 %v387_v10, %v379_v35  ;;  %v396_v40 = vmul.f32 %v395_v14, %v383_v32 }
 0x22a   :  { %v394_v41 = vadd.f32 %v392_v25, %v389_v34  ;;  %v415_v42 = vmul.f32 %v413_v15, %v377_v29  ;;  %v423_v43 = vmul.f32 %v421_v16, %v386_v33  ;;  %v402_v44 = vmul.f32 %v400_v19, %v377_v29 }
 0x22b   :  { %v419_v45 = vadd.f32 %v417_v23, %v414_v38  ;;  %v393_v46 = vadd.f32 %v391_v24, %v388_v39  ;;  %v410_v47 = vmul.f32 %v408_v20, %v386_v33  ;;  %v401_v48 = vmul.f32 %v400_v19, %v379_v35 }
 0x22c   :  { %v399_v49 = vadd.f32 %v397_v37, %v394_v41  ;;  %v420_v50 = vadd.f32 %v418_v26, %v415_v42  ;;  %v407_v51 = vadd.f32 %v405_v27, %v402_v44  ;;  %v409_v56 = vmul.f32 %v408_v20, %v383_v32 }
 0x22d   :  { %v424_v52 = vadd.f32 %v422_v36, %v419_v45  ;;  %v398_v54 = vadd.f32 %v396_v40, %v393_v46  ;;  %v406_v55 = vadd.f32 %v404_v28, %v401_v48  ;;  %v471_v15 = vstv %s974_s15 }
 0x22e   :  { %428 = vrot.lane.b32.xlu2 %v399_v49, %s671_s27  ;;  %v425_v57 = vadd.f32 %v423_v43, %v420_v50  ;;  %v412_v59 = vadd.f32 %v410_v47, %v407_v51  ;;  %v489_v16 = vstv %s976_s16  ;;  %v497_v17 = vstv %s980_s17 }
 0x22f   :  { %432 = vrot.lane.b32.xlu0 %v424_v52, %s672_s28  ;;  %426 = vrot.lane.b32.xlu1 %v398_v54, %s671_s27  ;;  %v411_v60 = vadd.f32 %v409_v56, %v406_v55  ;;  %v476_v20 = vstv %s982_s0  ;;  %v484_v21 = vstv %s984_s1 }
 0x237   :  { %434 = vrot.lane.b32.xlu1 %v425_v57, %s672_s28 }
 0x288   :  { %v429_v63 = vpop.permute.xlu2 %428 }
 0x289   :  { %v431_v2 = vsel %vm756_vm10, %v429_v63, 0.0 }
 0x28a   :  { %v439_v6 = vadd.f32 %v431_v2, %v412_v59 }
 0x2a1   :  { %v427_v61 = vpop.permute.xlu1 %426  ;;  %v433_v0 = vpop.permute.xlu0 %432 }
 0x2a2   :  { %v430_v62 = vsel %vm756_vm10, %v427_v61, 0.0  ;;  %v436_v3 = vsel %vm770_vm12, %v433_v0, 0.0 }
 0x2a3   :  { %v438_v1 = vadd.f32 %v430_v62, %v411_v60 }
 0x2a5   :  { %v440_v5 = vadd.f32 %v438_v1, %v436_v3 }
 0x2a7   :  { %v451_v18 = vrot.slane %v440_v5, 7  ;;  %v457_v19 = vrot.slane %v440_v5, 1  ;;  %v493_v24 = vmul.f32 %v492_v12, %v440_v5  ;;  %v467_v25 = vmul.f32 %v466_v9, %v440_v5 }
 0x2a8   :  { %v480_v28 = vmul.f32 %v479_v13, %v440_v5 }
 0x2a9   :  { %v435_v7 = vpop.permute.xlu1 %434 }
 0x2aa   :  { %v437_v10 = vsel %vm770_vm12, %v435_v7, 0.0 }
 0x2ab   :  { %v441_v14 = vadd.f32 %v439_v6, %v437_v10 }
 0x2ad   :  { %v452_v22 = vrot.slane %v441_v14, 7  ;;  %v458_v23 = vrot.slane %v441_v14, 1  ;;  %v468_v26 = vmul.f32 %v466_v9, %v441_v14  ;;  %v494_v27 = vmul.f32 %v492_v12, %v441_v14 }
 0x2ae   :  { %v481_v29 = vmul.f32 %v479_v13, %v441_v14 }
 0x2af   :  { %v453_v30 = vsel %vm71_vm1, %v451_v18, %v452_v22  ;;  %v460_v31 = vsel %vm78_vm2, %v458_v23, %v457_v19  ;;  %v454_v32 = vsel %vm71_vm1, %v452_v22, %v451_v18  ;;  %v459_v33 = vsel %vm78_vm2, %v457_v19, %v458_v23 }
 0x2b0   :  { %v462_v34 = vsel %vm51_vm3, %v460_v31, 0.0  ;;  %v465_v35 = vmul.f32 %v463_v11, %v453_v30  ;;  %v455_v36 = vsel %vm48_vm0, %v454_v32, 0.0  ;;  %v498_v37 = vmul.f32 %v497_v17, %v459_v33 }
 0x2b1   :  { %v473_v38 = vmul.f32 %v471_v15, %v462_v34  ;;  %v490_v39 = vmul.f32 %v489_v16, %v455_v36  ;;  %v464_v40 = vmul.f32 %v463_v11, %v455_v36  ;;  %v472_v41 = vmul.f32 %v471_v15, %v459_v33 }
 0x2b2   :  { %v470_v42 = vadd.f32 %v468_v26, %v465_v35  ;;  %v491_v43 = vmul.f32 %v489_v16, %v453_v30  ;;  %v499_v44 = vmul.f32 %v497_v17, %v462_v34  ;;  %v477_v45 = vmul.f32 %v476_v20, %v455_v36 }
 0x2b3   :  { %v495_v46 = vadd.f32 %v493_v24, %v490_v39  ;;  %v469_v47 = vadd.f32 %v467_v25, %v464_v40  ;;  %v485_v48 = vmul.f32 %v484_v21, %v459_v33  ;;  %v478_v49 = vmul.f32 %v476_v20, %v453_v30 }
 0x2b4   :  { %v475_v50 = vadd.f32 %v473_v38, %v470_v42  ;;  %v496_v8 = vadd.f32 %v494_v27, %v491_v43  ;;  %v482_v51 = vadd.f32 %v480_v28, %v477_v45  ;;  %v486_v52 = vmul.f32 %v484_v21, %v462_v34 }
 0x2b5   :  { %v500_v54 = vadd.f32 %v498_v37, %v495_v46  ;;  %v474_v4 = vadd.f32 %v472_v41, %v469_v47  ;;  %v483_v55 = vadd.f32 %v481_v29, %v478_v49 }
 0x2b6   :  { %504 = vrot.lane.b32.xlu0 %v475_v50, %s671_s27  ;;  %v501_v56 = vadd.f32 %v499_v44, %v496_v8  ;;  %v487_v57 = vadd.f32 %v485_v48, %v482_v51 }
 0x2b7   :  { %508 = vrot.lane.b32.xlu1 %v500_v54, %s672_s28  ;;  %502 = vrot.lane.b32.xlu2 %v474_v4, %s671_s27  ;;  %v488_v59 = vadd.f32 %v486_v52, %v483_v55  ;;  %s526_s27 = sshll.u32 %s1033_s2, 4  ;;  %s527_s27 = int_to_ptr.hbm [resolvable:$true] %s526_s27 }
 0x2bf   :  { %510 = vrot.lane.b32.xlu2 %v501_v56, %s672_s28 }
 0x311   :  { %v503_v60 = vpop.permute.xlu2 %502 }
 0x312   :  { %v506_v61 = vsel %vm756_vm10, %v503_v60, 0.0 }
 0x313   :  { %v514_v0 = vadd.f32 %v506_v61, %v487_v57 }
 0x319   :  { %v511_v62 = vpop.permute.xlu2 %510 }
 0x31a   :  { %v513_v6 = vsel %vm770_vm12, %v511_v62, 0.0 }
 0x328   :  { %v505_v63 = vpop.permute.xlu0 %504 }
 0x329   :  { %v507_v1 = vsel %vm756_vm10, %v505_v63, 0.0  ;;  %v509_v2 = vpop.permute.xlu1 %508 }
 0x32a   :  { %v515_v3 = vadd.f32 %v507_v1, %v488_v59  ;;  %v512_v5 = vsel %vm770_vm12, %v509_v2, 0.0 }
 0x32b   :  { %v516_v7 = vadd.f32 %v514_v0, %v512_v5 }
 0x32c   :  { %v517_v9 = vadd.f32 %v515_v3, %v513_v6 }
 0x32d   :  { %518 = vst [vmem:[#allocation7] sm:$0xff] %v516_v7 }
 0x32e   :  { %519 = vst [vmem:[#allocation7 + $0x8] sm:$0xff] %v517_v9 }
 0x32f   :  { %532 = dma.vmem_to_hbm [thread:$0]  %s525_s21, 256, %s527_s27, [#allocation4], %s669_s18, %s669_s18, %s670_s19  }
 0x330   :  { %665 = dma.done.wait [#allocation4], 256  }
 0x331   :  { %666 = vsyncadd [#allocation4], 4294967040 }
 0x332   :  { %537 = vsyncpa [#allocation3], 1 }
 0x333   :  { %538 = vsyncpa [#allocation4], 1 }
 0x334   :  { %539 = vsyncpa [#allocation5], 1 }

</bundles_post_ra>
